<compile_context>
chip_gen: v5e
topology: v5e:2x2
jax: 0.10.0
libtpu: 0.0.40
codegen_flags: <defaults>
</compile_context>

<pallas_src>
import math

import jax
import jax.numpy as jnp
import numpy as np
from jax.experimental import pallas as pl
from jax.experimental.pallas import tpu as pltpu

WINDOW_SIZE = 11
SIGMA = 1.5
PAD = WINDOW_SIZE // 2
C1 = 0.01 ** 2
C2 = 0.03 ** 2

# MXU is bf16-native on v5e/v6e/v7x (f32xf32 matmul is multi-pass and several
# times slower).  bf16 operands add ~1e-3 relative error to mu/sigma; switch to
# jnp.float32 if strict numerical parity with the PyTorch reference is needed.
MATMUL_DTYPE = jnp.bfloat16


def _gaussian_1d(window_size, sigma):
    g = np.array(
        [math.exp(-((x - window_size // 2) ** 2) / (2.0 * sigma ** 2))
         for x in range(window_size)],
        dtype=np.float64,
    )
    return (g / g.sum()).astype(np.float32)


_G1D = _gaussian_1d(WINDOW_SIZE, SIGMA)  # compile-time constant (deterministic)


def _band_matrix(n, g1d=_G1D, pad=PAD):
    """Symmetric banded Toeplitz matrix B (n, n): B[a, b] = g1d[b - a + pad]
    for |a - b| <= pad, else 0.  Then
      x @ B  == zero-padded 'same' 11-tap gaussian FIR along the last axis,
      B @ x  == the same FIR along the first axis
    (g1d is symmetric, so one builder serves both directions)."""
    m = np.zeros((n, n), dtype=np.float32)
    for a in range(n):
        for b in range(max(0, a - pad), min(n, a + pad + 1)):
            m[a, b] = g1d[b - a + pad]
    return m


def _block_diag_band(h, bp):
    """block-diag of `bp` copies of the (h, h) band matrix: applies the
    H-direction FIR independently to each of the bp planes stacked along rows
    (zero off-diagonal blocks == per-plane zero padding, no cross-plane mix)."""
    gh = _band_matrix(h)
    m = np.zeros((bp * h, bp * h), dtype=np.float32)
    for p in range(bp):
        m[p * h:(p + 1) * h, p * h:(p + 1) * h] = gh
    return m


def _pick_planes_per_step(nc, h, w):
    """How many channel planes to batch per grid step.  Bigger fills the MXU M
    dimension and amortizes grid-step overhead for small images, but we keep
    >=2 grid steps (both v7x TensorCores busy) and bound the per-step block."""
    budget = max(1, (256 * 1024) // (h * w))      # <= ~1 MiB f32 per input block
    limit = budget if nc < 2 else min(budget, nc // 2)
    best = None
    for d in range(1, nc + 1):
        if nc % d != 0 or d > limit:
            continue
        if (d * h) % 8 == 0 or d == nc:           # keep (8,128) tiling rule happy
            best = d
    if best is None:
        best = nc   # single step; block shape equals full array dims (legal)
    return best


def _vmem_limit_bytes():
    """Generation-aware scoped-VMEM limit: ~75% of physical VMEM (~48 MiB on
    v7x's 64 MiB, ~96 MiB on v5e/v6e's 128 MiB); safe 48 MiB fallback."""
    try:
        info = pltpu.get_tpu_info()
        for name in ("vmem_capacity_bytes", "vmem_size_bytes", "vmem_bytes"):
            cap = getattr(info, name, None)
            if cap:
                return int(min(int(cap) * 3 // 4, 100 * 1024 * 1024))
    except Exception:
        pass
    return 48 * 1024 * 1024


def _make_kernel(bp, h, w, shared_g):
    bph = bp * h

    def _body(x1_ref, x2_ref, gh_m, gw_m, out_ref):
        # x1_ref / x2_ref: (bp*h, w) f32 -- bp channel planes stacked along rows.
        # gh_m: (bp*h, bp*h) block-diag gaussian band matrix (H-direction FIR).
        # gw_m: (w, w) gaussian band matrix (W-direction FIR).
        # out_ref: (8, w) f32 per-step partial sums:
        #   row0 = per-lane sum|diff|, row1 = per-lane sum diff^2,
        #   row2 = per-lane sum ssim_map, rows 3..7 = 0.
        x1 = x1_ref[...]
        x2 = x2_ref[...]

        # L1 / MSE partials: sublane-only (axis=0) reductions keep the lane
        # axis; the final 128-wide lane sum is finished in the JAX wrapper.
        diff = x1 - x2
        sum_abs = jnp.sum(jnp.abs(diff), axis=0, keepdims=True)      # (1, w)
        sum_sq = jnp.sum(diff * diff, axis=0, keepdims=True)         # (1, w)

        # Separable 11x11 zero-padded gaussian conv of the 5 SSIM signals as
        # 6 MXU matmul issues (bf16 operands, f32 accumulate).
        signals = (x1, x2, x1 * x1, x2 * x2, x1 * x2)
        hconv = [
            jnp.dot(gh_m, s.astype(MATMUL_DTYPE),
                    preferred_element_type=jnp.float32)
            for s in signals
        ]
        stacked = jnp.concatenate(hconv, axis=0).astype(MATMUL_DTYPE)  # (5*bph, w)
        conv = jnp.dot(stacked, gw_m, preferred_element_type=jnp.float32)

        mu1 = conv[0 * bph:1 * bph]
        mu2 = conv[1 * bph:2 * bph]
        e11 = conv[2 * bph:3 * bph]
        e22 = conv[3 * bph:4 * bph]
        e12 = conv[4 * bph:5 * bph]

        mu1_sq = mu1 * mu1
        mu2_sq = mu2 * mu2
        mu1_mu2 = mu1 * mu2
        sigma1_sq = e11 - mu1_sq
        sigma2_sq = e22 - mu2_sq
        sigma12 = e12 - mu1_mu2

        numer = (2.0 * mu1_mu2 + C1) * (2.0 * sigma12 + C2)
        denom = (mu1_sq + mu2_sq + C1) * (sigma1_sq + sigma2_sq + C2)
        # denom stays positive (C2 = 9e-4 dominates), so the EUP approximate
        # reciprocal is safe; use approx=False for bitwise-strict parity.
        ssim_map = numer * pl.reciprocal(denom, approx=True)
        sum_ssim = jnp.sum(ssim_map, axis=0, keepdims=True)          # (1, w)

        out_ref[...] = jnp.concatenate(
            [sum_abs, sum_sq, sum_ssim, jnp.zeros((5, w), jnp.float32)], axis=0)

    if shared_g:
        def kernel(x1_ref, x2_ref, g_ref, out_ref):
            g = g_ref[...]
            _body(x1_ref, x2_ref, g, g, out_ref)
    else:
        def kernel(x1_ref, x2_ref, gh_ref, gw_ref, out_ref):
            _body(x1_ref, x2_ref, gh_ref[...], gw_ref[...], out_ref)
    return kernel


@jax.jit
def huwienet_loss_pallas(output, gt):
    """output, gt: (N, C, H, W) arrays (NCHW, like PyTorch).
    Returns [l1_loss, ssim_loss, mse_val, total_loss] as a (4,) f32 array."""
    N, C, H, W = output.shape
    NC = N * C
    x1 = output.astype(jnp.float32).reshape(NC * H, W)
    x2 = gt.astype(jnp.float32).reshape(NC * H, W)

    bp = _pick_planes_per_step(NC, H, W)
    steps = NC // bp
    shared_g = (bp == 1 and H == W)   # Gh == Gw -> pass one resident matrix

    gw = jnp.asarray(_band_matrix(W), dtype=MATMUL_DTYPE)
    plane_spec = pl.BlockSpec((bp * H, W), lambda i: (i, 0))
    in_specs = [plane_spec, plane_spec]
    args = [x1, x2]
    if shared_g:
        in_specs.append(pl.BlockSpec((W, W), lambda i: (0, 0)))
        args.append(gw)
    else:
        gh = jnp.asarray(_block_diag_band(H, bp), dtype=MATMUL_DTYPE)
        in_specs.append(pl.BlockSpec((bp * H, bp * H), lambda i: (0, 0)))
        in_specs.append(pl.BlockSpec((W, W), lambda i: (0, 0)))
        args.extend([gh, gw])

    partials = pl.pallas_call(
        _make_kernel(bp, H, W, shared_g),
        out_shape=jax.ShapeDtypeStruct((steps, 8, W), jnp.float32),
        grid=(steps,),
        in_specs=in_specs,
        out_specs=pl.BlockSpec((None, 8, W), lambda i: (i, 0, 0)),
        compiler_params=pltpu.CompilerParams(
            dimension_semantics=("parallel",),
            vmem_limit_bytes=_vmem_limit_bytes(),
        ),
    )(*args)

    # Tiny finishing reduction in the wrapper: sum over grid steps and lanes.
    sums = jnp.sum(partials[:, :3, :], axis=(0, 2))   # (3,)
    n_elem = jnp.float32(NC * H * W)
    l1_loss = sums[0] / n_elem
    mse_val = sums[1] / n_elem * (255.0 * 255.0)
    ssim_loss = 1.0 - sums[2] / n_elem
    total_loss = 1.0 * l1_loss + 1.0 * ssim_loss      # l1_loss_w = ssim_loss_w = 1.0
    return jnp.stack([l1_loss, ssim_loss, mse_val, total_loss])


class LossHUWIENet:
    """JAX/Pallas port of Loss(model_name='HUWIENet')."""

    def __init__(self):
        self.model_name = "HUWIENet"
        self.loss_name = ["l1_loss", "ssim_loss", "mse_val", "total_loss"]
        self.num_loss_fn = len(self.loss_name)
        self.l1_loss_w = 1.0
        self.ssim_loss_w = 1.0

    def forward(self, raw, output, gt):
        output_img, _param = output              # param is unused for HUWIENet
        losses = huwienet_loss_pallas(output_img, gt)
        loss_val = [losses[0], losses[1], losses[2], losses[3]]
        log = " ".join(
            self.loss_name[k] + ": " + str(np.round(float(loss_val[k]), 5))
            for k in range(self.num_loss_fn)
        )
        return loss_val, log

    __call__ = forward


if __name__ == "__main__":
    key = jax.random.PRNGKey(0)
    k1, k2, k3, k4 = jax.random.split(key, 4)

    # SSIMLoss in the reference is built for channel=3 images.
    N, C, H, W = 2, 3, 16, 16
    raw = jax.random.uniform(k1, (N, C, H, W), dtype=jnp.float32)
    output_img = jax.random.uniform(k2, (N, C, H, W), dtype=jnp.float32)
    param = jax.random.uniform(k3, (N, C, H, W), dtype=jnp.float32)  # unused (HUWIENet)
    gt = jax.random.uniform(k4, (N, C, H, W), dtype=jnp.float32)

    loss_mod = LossHUWIENet()
    loss_val, log = loss_mod(raw, (output_img, param), gt)
    jax.block_until_ready(loss_val)

    # Also exercise the Bp=1 / shared-G (square-plane) kernel variant.
    out2 = jax.random.uniform(k2, (1, 3, 32, 32), dtype=jnp.float32)
    gt2 = jax.random.uniform(k4, (1, 3, 32, 32), dtype=jnp.float32)
    jax.block_until_ready(huwienet_loss_pallas(out2, gt2))

    print("KERNEL_OK")
</pallas_src>

<mosaic_0001>
module attributes {stable_mosaic.version = 11 : i64} {
  func.func @kernel(%arg0: i32, %arg1: memref<48x16xf32, #tpu.memory_space<vmem>>, %arg2: memref<48x16xf32, #tpu.memory_space<vmem>>, %arg3: memref<48x48xbf16, #tpu.memory_space<vmem>>, %arg4: memref<16x16xbf16, #tpu.memory_space<vmem>>, %arg5: memref<1x8x16xf32, #tpu.memory_space<vmem>>) attributes {dimension_semantics = [#tpu.dimension_semantics<parallel>], iteration_bounds = array<i64: 2>, scalar_prefetch = 0 : i64, scratch_operands = 0 : i64, tpu.core_type = #tpu.core_type<tc>, window_params = [{transform_indices = @transform_0, window_bounds = array<i64: 48, 16>}, {transform_indices = @transform_1, window_bounds = array<i64: 48, 16>}, {pipeline_mode = #tpu.pipeline_mode<synchronous>, transform_indices = @transform_2, window_bounds = array<i64: 48, 48>}, {pipeline_mode = #tpu.pipeline_mode<synchronous>, transform_indices = @transform_3, window_bounds = array<i64: 16, 16>}, {transform_indices = @transform_4, window_bounds = array<i64: 1, 8, 16>}]} {
    %c0 = arith.constant 0 : index
    %c0_0 = arith.constant 0 : index
    %0 = vector.load %arg3[%c0, %c0_0] : memref<48x48xbf16, #tpu.memory_space<vmem>>, vector<48x48xbf16>
    %c0_1 = arith.constant 0 : index
    %c0_2 = arith.constant 0 : index
    %1 = vector.load %arg4[%c0_1, %c0_2] : memref<16x16xbf16, #tpu.memory_space<vmem>>, vector<16x16xbf16>
    %c0_3 = arith.constant 0 : index
    %c0_4 = arith.constant 0 : index
    %2 = vector.load %arg1[%c0_3, %c0_4] : memref<48x16xf32, #tpu.memory_space<vmem>>, vector<48x16xf32>
    %c0_5 = arith.constant 0 : index
    %c0_6 = arith.constant 0 : index
    %3 = vector.load %arg2[%c0_5, %c0_6] : memref<48x16xf32, #tpu.memory_space<vmem>>, vector<48x16xf32>
    %4 = arith.subf %2, %3 : vector<48x16xf32>
    %5 = math.absf %4 : vector<48x16xf32>
    %cst = arith.constant dense<0.000000e+00> : vector<16xf32>
    %6 = vector.multi_reduction <add>, %5, %cst [0] : vector<48x16xf32> to vector<16xf32>
    %7 = vector.shape_cast %6 : vector<16xf32> to vector<1x16xf32>
    %8 = arith.mulf %4, %4 : vector<48x16xf32>
    %cst_7 = arith.constant dense<0.000000e+00> : vector<16xf32>
    %9 = vector.multi_reduction <add>, %8, %cst_7 [0] : vector<48x16xf32> to vector<16xf32>
    %10 = vector.shape_cast %9 : vector<16xf32> to vector<1x16xf32>
    %11 = arith.mulf %2, %2 : vector<48x16xf32>
    %12 = arith.mulf %3, %3 : vector<48x16xf32>
    %13 = arith.mulf %2, %3 : vector<48x16xf32>
    %14 = arith.truncf %2 : vector<48x16xf32> to vector<48x16xbf16>
    %cst_8 = arith.constant dense<0.000000e+00> : vector<48x16xf32>
    %15 = tpu.matmul %0, %14, %cst_8 {dimension_numbers = #tpu.dot_dimension_numbers<[1], [0], [0], [1], [0, 0, 1, 1], [], []>} : vector<48x48xbf16>, vector<48x16xbf16>, vector<48x16xf32> -> vector<48x16xf32>
    %16 = arith.truncf %3 : vector<48x16xf32> to vector<48x16xbf16>
    %cst_9 = arith.constant dense<0.000000e+00> : vector<48x16xf32>
    %17 = tpu.matmul %0, %16, %cst_9 {dimension_numbers = #tpu.dot_dimension_numbers<[1], [0], [0], [1], [0, 0, 1, 1], [], []>} : vector<48x48xbf16>, vector<48x16xbf16>, vector<48x16xf32> -> vector<48x16xf32>
    %18 = arith.truncf %11 : vector<48x16xf32> to vector<48x16xbf16>
    %cst_10 = arith.constant dense<0.000000e+00> : vector<48x16xf32>
    %19 = tpu.matmul %0, %18, %cst_10 {dimension_numbers = #tpu.dot_dimension_numbers<[1], [0], [0], [1], [0, 0, 1, 1], [], []>} : vector<48x48xbf16>, vector<48x16xbf16>, vector<48x16xf32> -> vector<48x16xf32>
    %20 = arith.truncf %12 : vector<48x16xf32> to vector<48x16xbf16>
    %cst_11 = arith.constant dense<0.000000e+00> : vector<48x16xf32>
    %21 = tpu.matmul %0, %20, %cst_11 {dimension_numbers = #tpu.dot_dimension_numbers<[1], [0], [0], [1], [0, 0, 1, 1], [], []>} : vector<48x48xbf16>, vector<48x16xbf16>, vector<48x16xf32> -> vector<48x16xf32>
    %22 = arith.truncf %13 : vector<48x16xf32> to vector<48x16xbf16>
    %cst_12 = arith.constant dense<0.000000e+00> : vector<48x16xf32>
    %23 = tpu.matmul %0, %22, %cst_12 {dimension_numbers = #tpu.dot_dimension_numbers<[1], [0], [0], [1], [0, 0, 1, 1], [], []>} : vector<48x48xbf16>, vector<48x16xbf16>, vector<48x16xf32> -> vector<48x16xf32>
    %24 = tpu.concatenate %15, %17, %19, %21, %23 in 0 : vector<48x16xf32>, vector<48x16xf32>, vector<48x16xf32>, vector<48x16xf32>, vector<48x16xf32> -> vector<240x16xf32>
    %25 = arith.truncf %24 : vector<240x16xf32> to vector<240x16xbf16>
    %cst_13 = arith.constant dense<0.000000e+00> : vector<240x16xf32>
    %26 = tpu.matmul %25, %1, %cst_13 {dimension_numbers = #tpu.dot_dimension_numbers<[1], [0], [0], [1], [0, 0, 1, 1], [], []>} : vector<240x16xbf16>, vector<16x16xbf16>, vector<240x16xf32> -> vector<240x16xf32>
    %27 = vector.extract_strided_slice %26 {offsets = [0, 0], sizes = [48, 16], strides = [1, 1]} : vector<240x16xf32> to vector<48x16xf32>
    %28 = vector.extract_strided_slice %26 {offsets = [48, 0], sizes = [48, 16], strides = [1, 1]} : vector<240x16xf32> to vector<48x16xf32>
    %29 = vector.extract_strided_slice %26 {offsets = [96, 0], sizes = [48, 16], strides = [1, 1]} : vector<240x16xf32> to vector<48x16xf32>
    %30 = vector.extract_strided_slice %26 {offsets = [144, 0], sizes = [48, 16], strides = [1, 1]} : vector<240x16xf32> to vector<48x16xf32>
    %31 = vector.extract_strided_slice %26 {offsets = [192, 0], sizes = [48, 16], strides = [1, 1]} : vector<240x16xf32> to vector<48x16xf32>
    %32 = arith.mulf %27, %27 : vector<48x16xf32>
    %33 = arith.mulf %28, %28 : vector<48x16xf32>
    %34 = arith.mulf %27, %28 : vector<48x16xf32>
    %35 = arith.subf %29, %32 : vector<48x16xf32>
    %36 = arith.subf %30, %33 : vector<48x16xf32>
    %37 = arith.subf %31, %34 : vector<48x16xf32>
    %cst_14 = arith.constant 2.000000e+00 : f32
    %38 = vector.broadcast %cst_14 : f32 to vector<48x16xf32>
    %39 = arith.mulf %38, %34 : vector<48x16xf32>
    %cst_15 = arith.constant 9.99999974E-5 : f32
    %40 = vector.broadcast %cst_15 : f32 to vector<48x16xf32>
    %41 = arith.addf %39, %40 : vector<48x16xf32>
    %cst_16 = arith.constant 2.000000e+00 : f32
    %42 = vector.broadcast %cst_16 : f32 to vector<48x16xf32>
    %43 = arith.mulf %42, %37 : vector<48x16xf32>
    %cst_17 = arith.constant 8.99999984E-4 : f32
    %44 = vector.broadcast %cst_17 : f32 to vector<48x16xf32>
    %45 = arith.addf %43, %44 : vector<48x16xf32>
    %46 = arith.mulf %41, %45 : vector<48x16xf32>
    %47 = arith.addf %32, %33 : vector<48x16xf32>
    %cst_18 = arith.constant 9.99999974E-5 : f32
    %48 = vector.broadcast %cst_18 : f32 to vector<48x16xf32>
    %49 = arith.addf %47, %48 : vector<48x16xf32>
    %50 = arith.addf %35, %36 : vector<48x16xf32>
    %cst_19 = arith.constant 8.99999984E-4 : f32
    %51 = vector.broadcast %cst_19 : f32 to vector<48x16xf32>
    %52 = arith.addf %50, %51 : vector<48x16xf32>
    %53 = arith.mulf %49, %52 : vector<48x16xf32>
    %54 = tpu.reciprocal %53 {approx = true} : vector<48x16xf32> -> vector<48x16xf32>
    %55 = arith.mulf %46, %54 : vector<48x16xf32>
    %cst_20 = arith.constant dense<0.000000e+00> : vector<16xf32>
    %56 = vector.multi_reduction <add>, %55, %cst_20 [0] : vector<48x16xf32> to vector<16xf32>
    %57 = vector.shape_cast %56 : vector<16xf32> to vector<1x16xf32>
    %cst_21 = arith.constant 0.000000e+00 : f32
    %58 = vector.broadcast %cst_21 : f32 to vector<5x16xf32>
    %59 = tpu.concatenate %7, %10, %57, %58 in 0 : vector<1x16xf32>, vector<1x16xf32>, vector<1x16xf32>, vector<5x16xf32> -> vector<8x16xf32>
    %c0_22 = arith.constant 0 : index
    %c0_23 = arith.constant 0 : index
    %c0_24 = arith.constant 0 : index
    %60 = vector.load %arg5[%c0_22, %c0_23, %c0_24] : memref<1x8x16xf32, #tpu.memory_space<vmem>>, vector<1x8x16xf32>
    %61 = vector.shape_cast %60 : vector<1x8x16xf32> to vector<8x16xf32>
    %62 = vector.shape_cast %59 : vector<8x16xf32> to vector<1x8x16xf32>
    tpu.vector_store %arg5[%c0_22, %c0_23, %c0_24], %62 {strides = array<i32>} : memref<1x8x16xf32, #tpu.memory_space<vmem>>, vector<1x8x16xf32>,
    return
  }
  func.func @transform_0(%arg0: i32) -> (i32, i32) {
    %c0_i32 = arith.constant 0 : i32
    %c0_i32_0 = arith.constant 0 : i32
    return %arg0, %c0_i32 : i32, i32
  }
  func.func @transform_1(%arg0: i32) -> (i32, i32) {
    %c0_i32 = arith.constant 0 : i32
    %c0_i32_0 = arith.constant 0 : i32
    return %arg0, %c0_i32 : i32, i32
  }
  func.func @transform_2(%arg0: i32) -> (i32, i32) {
    %c0_i32 = arith.constant 0 : i32
    %c0_i32_0 = arith.constant 0 : i32
    %c0_i32_1 = arith.constant 0 : i32
    return %c0_i32, %c0_i32_0 : i32, i32
  }
  func.func @transform_3(%arg0: i32) -> (i32, i32) {
    %c0_i32 = arith.constant 0 : i32
    %c0_i32_0 = arith.constant 0 : i32
    %c0_i32_1 = arith.constant 0 : i32
    return %c0_i32, %c0_i32_0 : i32, i32
  }
  func.func @transform_4(%arg0: i32) -> (i32, i32, i32) {
    %c0_i32 = arith.constant 0 : i32
    %c0_i32_0 = arith.constant 0 : i32
    %c0_i32_1 = arith.constant 0 : i32
    return %arg0, %c0_i32, %c0_i32_0 : i32, i32, i32
  }
}

</mosaic_0001>

<bundles_post_ra>
// kernel: huwienet_loss_pallas.1
= control target key start
LH: loop header
LB: loop body
LE: loop exit
PB: predicated region body
PF: predicated region fallthrough
CT: control target
= control target key end

     0   :  { %9 = vsyncpa [#allocation3], 0  ;;  %s1646_s0 = inlined_call_operand.hbm [shape: f32[96,16], index: 0, kind: input, shape index: {}]   ;;  %s1647_s1 = inlined_call_operand.hbm [shape: f32[96,16], index: 1, kind: input, shape index: {}]   ;;  %s1648_s2 = inlined_call_operand.hbm [shape: bf16[48,48], index: 2, kind: input, shape index: {}]   ;;  %s1649_s3 = inlined_call_operand.hbm [shape: bf16[16,16], index: 3, kind: input, shape index: {}]   ;;  %s1650_s4 = inlined_call_operand.vmem [shape: f32[2,8,16], index: 4, kind: output, shape index: {}]  }
   0x1   :  { %11 = vsyncpa [#allocation3 + $0x1], 0 }
   0x2   :  { %12 = vsyncpa [#allocation5], 0 }
   0x3   :  { %14 = vsyncpa [#allocation5 + $0x1], 0 }
   0x4   :  { %15 = vsyncpa [#allocation8], 0  ;;  %s1286_s15 = smov 0   ;;  %s1288_s16 = smov 0  }
   0x5   :  { %s1290_s17 = smov 0   ;;  %s1292_s18 = smov 0  }
   0x6 LB: > { %s1305_s19 = sadd.s32 4294967295, %s1253_s18   ;;  %p41_p0 = scmp.ne.s32.totalorder %s1245_s16, %s1241_s15  ;;  %s1253_s18 = sphi %s1292_s18, %s1657_s18   ;;  %s1249_s17 = sphi %s1290_s17, %s1656_s17   ;;  %s1245_s16 = sphi %s1288_s16, %s1655_s16   ;;  %s1241_s15 = sphi %s1286_s15, %s1654_s15  }
   0x7   : > { %p42_p1 = scmp.eq.s32.totalorder %s1305_s19, 0  ;;  %p937_p2 = scmp.ge.s32.totalorder %s1253_s18, 1 }
   0x8   : > { %p146_p3 = scmp.lt.s32.totalorder %s1253_s18, 3  ;;  %s157_s23 = sshll.u32 %s1648_s2, 4  ;;  %s158_s23 = int_to_ptr.hbm [resolvable:$true] %s157_s23 }
   0x9   : > { %p1313_p4 = por %p42_p1, %p41_p0  ;;  %s1255_s25 = smov [#allocation6]  }
   0xa   : > { %p1320_p5 = pnand %p937_p2, %p146_p3  ;;  %s159_s26 = sshll.u32 %s1255_s25, 4  ;;  %s160_s26 = int_to_ptr.vmem [resolvable:$true] %s159_s26 }
   0xb   : > { %s171_s29 = sshll.u32 %s1649_s3, 4  ;;  %s1256_s30 = smov 64   ;;  %s172_s29 = int_to_ptr.hbm [resolvable:$true] %s171_s29 }
   0xc   : > { %p1018_p6 = pneg %p1320_p5  ;;  %s1257_s5 = smov 4  }
   0xd   : > { %s1258_s6 = smov [#allocation7]   ;;  %s1332_s8 = sadd.s32 1, %s1253_s18  }
   0xe   : > { %p1019_p7 = pnand %p1018_p6, %p42_p1  ;;  %s173_s7 = sshll.u32 %s1258_s6, 4  ;;  %s174_s7 = int_to_ptr.vmem [resolvable:$true] %s173_s7 }
   0xf   : > { %s28_s9 = sadd.s32 1, %s1249_s17  ;;  %s25_s10 = ssub.s32 %s1253_s18, %s1332_s8 }
  0x10   : > { %1021 = dma.hbm_to_vmem [thread:$0]  (!%p1019_p7), %s158_s23, 384, %s160_s26, [#allocation5], %s1256_s30, %s1256_s30, %s1257_s5  }
  0x11   : > { %1024 = dma.hbm_to_vmem [thread:$0]  (!%p1019_p7), %s172_s29, 128, %s174_s7, [#allocation8], %s1256_s30, %s1256_s30, %s1257_s5  }
  0x12   : > { %p35_p8 = scmp.ne.s32.totalorder %s1249_s17, %s1245_s16  ;;  %p26_p9 = scmp.eq.s32.totalorder %s25_s10, 0 }
  0x13   : > { %p36_p10 = scmp.eq.s32.totalorder %s1253_s18, 0  ;;  %p1034_p11 = scmp.lt.s32.totalorder %s1253_s18, 2 }
  0x14   : > { %s187_s11 = sand.u32 1, %s1249_s17   ;;  %s995_s14 = smul.u32 48, %s1253_s18 }
  0x15   : > { %s1343_s12 = scalar_select %p26_p9, %s1249_s17, %s28_s9  }
  0x16   : > { %p37_p12 = por %p36_p10, %p35_p8  ;;  %s1345_s13 = smul.u32 48, %s187_s11 }
  0x17   : > { %s196_s23 = scalar_lea.hbm %s1646_s0, %s995_s14  ;;  %s188_s28 = scalar_lea.sflag [#allocation3], %s187_s11 }
  0x18   : > { %p1348_p13 = pnand %p1034_p11, %p37_p12  ;;  %s191_s25 = scalar_lea.vmem [#allocation2], %s1345_s13 }
  0x19   : > { %s199_s26 = sshll.u32 %s191_s25, 4  ;;  %s197_s27 = sshll.u32 %s196_s23, 4  ;;  %s200_s26 = int_to_ptr.vmem [resolvable:$true] %s199_s26  ;;  %s198_s27 = int_to_ptr.hbm [resolvable:$true] %s197_s27 }
  0x1a   : > { %s1147_s29 = sshra.s32 %s198_s27, 4  ;;  %p1151_p2 = pneg %p1348_p13  ;;  %s1148_s29 = int_to_ptr.hbm [resolvable:$true] %s1147_s29 }
  0x1b   : > { %s1149_s30 = scalar_lea.hbm %s1148_s29, 48  ;;  %s1154_s7 = scalar_lea.hbm %s1646_s0, 96 }
  0x1c   : > { %p1150_p0 = scmp.ne.s32.totalorder %s1148_s29, %s1149_s30  ;;  %p1155_p7 = scmp.lt.s32.totalorder %s1148_s29, %s1646_s0 }
  0x1d   : > { %p1156_p8 = scmp.lt.s32.totalorder %s1154_s7, %s1149_s30 }
  0x1e   : > { %p1152_p3 = pnand %p1151_p2, %p1150_p0 }
  0x1f   : > { %p1157_p9 = por %p1156_p8, %p1155_p7 }
  0x20   : > { %p1153_p6 = pneg %p1152_p3 }
  0x22   : > { %p1158_p10 = pnand %p1157_p9, %p1153_p6 }
  0x24   : > { %1161 = shalt.err (!%p1158_p10)
}
  0x25   : > { %s1259_s11 = smov 128   ;;  %s1260_s21 = smov 8  }
  0x26   : > { %1028 = dma.hbm_to_vmem [thread:$0]  (!%p1348_p13), %s198_s27, 768, %s200_s26, %s188_s28, %s1259_s11, %s1259_s11, %s1260_s21  }
  0x27   : > { %s209_s22 = sand.u32 1, %s1253_s18   ;;  %s218_s5 = scalar_lea.hbm %s1647_s1, %s995_s14 }
  0x28   : > { %s219_s29 = sshll.u32 %s218_s5, 4  ;;  %s213_s30 = scalar_lea.vmem [#allocation4], %s1345_s13  ;;  %s220_s29 = int_to_ptr.hbm [resolvable:$true] %s219_s29 }
  0x29   : > { %s221_s6 = sshll.u32 %s213_s30, 4  ;;  %s210_s7 = scalar_lea.sflag [#allocation5], %s209_s22  ;;  %s222_s6 = int_to_ptr.vmem [resolvable:$true] %s221_s6 }
  0x2a   : > { %s1177_s9 = sshra.s32 %s220_s29, 4  ;;  %s1184_s27 = scalar_lea.hbm %s1647_s1, 96  ;;  %s1178_s9 = int_to_ptr.hbm [resolvable:$true] %s1177_s9 }
  0x2b   : > { %s1179_s10 = scalar_lea.hbm %s1178_s9, 48  ;;  %p1185_p3 = scmp.lt.s32.totalorder %s1178_s9, %s1647_s1 }
  0x2c   : > { %p1180_p11 = scmp.ne.s32.totalorder %s1178_s9, %s1179_s10  ;;  %p1186_p6 = scmp.lt.s32.totalorder %s1184_s27, %s1179_s10 }
  0x2e   : > { %p1182_p12 = pnand %p1180_p11, %p1151_p2  ;;  %p1187_p7 = por %p1186_p6, %p1185_p3 }
  0x30   : > { %p1183_p0 = pneg %p1182_p12 }
  0x32   : > { %p1188_p8 = pnand %p1187_p7, %p1183_p0 }
  0x34   : > { %1191 = shalt.err (!%p1188_p8)
}
  0x35   : > { %1031 = dma.hbm_to_vmem [thread:$0]  (!%p1348_p13), %s220_s29, 768, %s222_s6, %s210_s7, %s1259_s11, %s1259_s11, %s1260_s21  }
  0x36   : > { %233 = sbr.rel (%p1320_p5) target bundleno = 497 (0x1f1), region = 36  ;;  %s235_s13 = sand.u32 (!%p1320_p5), 1, %s1245_s16  }
  0x37   : > { %s1005_s22 = smul.u32 (!%p1320_p5), 48, %s235_s13  ;;  %s236_s23 = scalar_lea.sflag (!%p1320_p5), [#allocation3], %s235_s13 }
  0x39   : > { %s1392_s25 = scalar_lea.vmem (!%p1320_p5), [#allocation2], %s1005_s22 }
  0x3b   : > { %1224 = dma.done.wait (%p1313_p4), %s236_s23, 768  }
  0x3c   : > { %1226 = vsyncadd (%p1313_p4), %s236_s23, 4294966528  ;;  %s245_s5 = sand.u32 1, %s1305_s19   ;;  %s1399_s11 = scalar_lea.vmem [#allocation4], %s1005_s22 }
  0x3d   : > { %s246_s15 = scalar_lea.sflag [#allocation5], %s245_s5 }
  0x3e   : > { %1228 = dma.done.wait (%p1313_p4), %s246_s15, 768  }
  0x3f   : > { %1230 = vsyncadd (%p1313_p4), %s246_s15, 4294966528 }
  0x40   : > { %1232 = dma.done.wait (%p42_p1), [#allocation5], 384  }
  0x41   : > { %1234 = vsyncadd (%p42_p1), [#allocation5], 4294966912 }
  0x42   : > { %1236 = dma.done.wait (%p42_p1), [#allocation8], 128  }
  0x43   : > { %1238 = vsyncadd (%p42_p1), [#allocation8], 4294967168  ;;  %v1414_v0 = vld [vmem:[%s1392_s25 + $0x20] sm:$0xff]  ;;  %v1417_v1 = vld [vmem:[%s1392_s25 + $0x28] sm:$0xff]  ;;  %vm328_vm0 = vcmask 130048   ;;  %vm405_vm1 = vcmask 392192  }
  0x44   : > { %v1420_v2 = vld [vmem:[%s1399_s11 + $0x20] sm:$0xff]  ;;  %v389_v3 = vpack.c.bf16 %v1417_v1, %v1414_v0  ;;  %v1425_v4 = vld [vmem:[%s1399_s11 + $0x28] sm:$0xff]  ;;  %v1434_v7 = vld [vmem:[%s1392_s25 + $0x10] sm:$0xff]  ;;  %v373_v46 = vmul.f32 %v1414_v0, %v1414_v0  ;;  %v374_v47 = vmul.f32 %v1417_v1, %v1417_v1  ;;  %vm822_vm2 = vcmask 1040384   ;;  %p291_p1 = scmp.lt.s32.totalorder %s1305_s19, 1 }
  0x45   : > { %v1429_v5 = vsub.f32 %v1414_v0, %v1420_v2  ;;  %v379_v6 = vmul.f32 %v1420_v2, %v1420_v2  ;;  %v1437_v8 = vld [vmem:[%s1392_s25 + $0x18] sm:$0xff]  ;;  %v1441_v9 = vsub.f32 %v1417_v1, %v1425_v4  ;;  %v441_v10 = vpack.c.bf16 %v1425_v4, %v1420_v2  ;;  %v1448_v12 = vld [vmem:[%s1399_s11 + $0x10] sm:$0xff]  ;;  %v1462_v20 = vld [vmem:[%s1392_s25] sm:$0xff] }
  0x46   : > { %v380_v11 = vmul.f32 %v1425_v4, %v1425_v4  ;;  %v1451_v13 = vld [vmem:[%s1399_s11 + $0x18] sm:$0xff]  ;;  %420 = vmatpush.bf16.msra.mxu0 %v389_v3  ;;  %v388_v14 = vpack.c.bf16 %v1437_v8, %v1434_v7  ;;  %v318_v15 = vsub.f32 %v1434_v7, %v1448_v12  ;;  %v1465_v21 = vld [vmem:[%s1392_s25 + $0x8] sm:$0xff]  ;;  %v1471_v25 = vld [vmem:[%s1399_s11] sm:$0xff]  ;;  %v377_v29 = vmul.f32 %v1448_v12, %v1448_v12  ;;  %s1659_s19 = smov (!%p291_p1, %s1305_s19), 1 }
  0x47   : > { %v319_v16 = vsub.f32 %v1437_v8, %v1451_v13  ;;  %447 = vmatpush.bf16.msra.mxu1 %v441_v10  ;;  %v440_v18 = vpack.c.bf16 %v1451_v13, %v1448_v12  ;;  %v326_v22 = vand.u32 2147483647, %v1429_v5  ;;  %v350_v23 = vmul.f32 %v1429_v5, %v1429_v5  ;;  %v1474_v26 = vld [vmem:[%s1399_s11 + $0x8] sm:$0xff]  ;;  %v1495_v43 = vld [vmem:[#allocation6] sm:$0xff]  ;;  %s946_s20 = sshll.u32 %s1659_s19, 3 }
  0x48   : > { %v495_v17 = vpack.c.bf16 %v380_v11, %v379_v6  ;;  %v324_v19 = vand.u32 2147483647, %v318_v15  ;;  %v348_v24 = vmul.f32 %v318_v15, %v318_v15  ;;  %v327_v27 = vand.u32 2147483647, %v1441_v9  ;;  %s294_s29 = scalar_lea.vmem %s1650_s4, %s946_s20 }
  0x49   : > { %v325_v28 = vand.u32 2147483647, %v319_v16  ;;  %v378_v30 = vmul.f32 %v1451_v13, %v1451_v13  ;;  %v349_v32 = vmul.f32 %v319_v16, %v319_v16  ;;  %v387_v33 = vpack.c.bf16 %v1465_v21, %v1462_v20 }
  0x4a   : > { %501 = vmatpush.bf16.msra.mxu3 %v495_v17  ;;  %421 = vmatpush.bf16.msra.mxu0 %v388_v14  ;;  %v332_v31 = vsel %vm328_vm0, %v324_v19, 0.0  ;;  %v316_v34 = vsub.f32 %v1462_v20, %v1471_v25  ;;  %v355_v35 = vsel %vm328_vm0, %v348_v24, 0.0  ;;  %v317_v37 = vsub.f32 %v1465_v21, %v1474_v26 }
  0x4b   : > { %448 = vmatpush.bf16.msra.mxu1 %v440_v18  ;;  %v494_v36 = vpack.c.bf16 %v378_v30, %v377_v29  ;;  %v439_v38 = vpack.c.bf16 %v1474_v26, %v1471_v25  ;;  %v375_v41 = vmul.f32 %v1471_v25, %v1471_v25  ;;  %v376_v42 = vmul.f32 %v1474_v26, %v1474_v26  ;;  %v998_v30 = vld [vmem:[#allocation6 + $0x8] sm:$0xff] }
  0x4c   : > { %v322_v39 = vand.u32 2147483647, %v316_v34  ;;  %v346_v40 = vmul.f32 %v316_v34, %v316_v34  ;;  %v323_v44 = vand.u32 2147483647, %v317_v37  ;;  %v347_v45 = vmul.f32 %v317_v37, %v317_v37  ;;  %v1000_v37 = vld [vmem:[#allocation7] sm:$0xff] }
  0x4d   : > { %v493_v50 = vpack.c.bf16 %v376_v42, %v375_v41  ;;  %v371_v51 = vmul.f32 %v1434_v7, %v1434_v7  ;;  %v468_v54 = vpack.c.bf16 %v374_v47, %v373_v46  ;;  %v372_v55 = vmul.f32 %v1437_v8, %v1437_v8 }
  0x4e   : > { %502 = vmatpush.bf16.msra.mxu3 %v494_v36  ;;  %422 = vmatpush.bf16.msra.mxu0 %v387_v33  ;;  %v329_v48 = vsel %vm328_vm0, %v322_v39, 0.0  ;;  %v352_v49 = vsel %vm328_vm0, %v346_v40, 0.0  ;;  %v330_v52 = vsel %vm328_vm0, %v323_v44, 0.0  ;;  %v353_v53 = vsel %vm328_vm0, %v347_v45, 0.0  ;;  %v999_v36 = vld [vmem:[#allocation6 + $0x10] sm:$0xff] }
  0x4f   : > { %449 = vmatpush.bf16.msra.mxu1 %v439_v38  ;;  %v351_v56 = vmul.f32 %v1441_v9, %v1441_v9  ;;  %v334_v57 = vsel %vm328_vm0, %v325_v28, 0.0  ;;  %v331_v58 = vadd.f32 %v330_v52, %v329_v48  ;;  %v354_v59 = vadd.f32 %v353_v53, %v352_v49  ;;  %474 = vmatpush.bf16.msra.mxu2 %v468_v54 }
  0x50   : > { %v357_v60 = vsel %vm328_vm0, %v349_v32, 0.0  ;;  %v369_v61 = vmul.f32 %v1462_v20, %v1462_v20  ;;  %v385_v62 = vmul.f32 %v1420_v2, %v1414_v0  ;;  %v386_v63 = vmul.f32 %v1425_v4, %v1417_v1 }
  0x51   : > { %959 = vmatmul.msk.bf16.vlgmr.msra.gmra.mxu0 %vm405_vm1, %v1495_v43  ;;  %v333_v3 = vadd.f32 %v332_v31, %v331_v58  ;;  %v356_v5 = vadd.f32 %v355_v35, %v354_v59  ;;  %v467_v6 = vpack.c.bf16 %v372_v55, %v371_v51  ;;  %v370_v9 = vmul.f32 %v1465_v21, %v1465_v21 }
  0x52   : > { %503 = vmatpush.bf16.msra.mxu3 %v493_v50  ;;  %962 = vmatmul.msk.bf16.vlgmr.msra.gmra.mxu1 %vm405_vm1, %v1495_v43  ;;  %v336_v10 = vsel %vm328_vm0, %v326_v22, 0.0  ;;  %v359_v11 = vsel %vm328_vm0, %v350_v23, 0.0  ;;  %v522_v14 = vpack.c.bf16 %v386_v63, %v385_v62  ;;  %v383_v0 = vmul.f32 %v1448_v12, %v1434_v7 }
  0x53   : > { %v335_v15 = vadd.f32 %v334_v57, %v333_v3  ;;  %v358_v16 = vadd.f32 %v357_v60, %v356_v5  ;;  %v384_v1 = vmul.f32 %v1451_v13, %v1437_v8  ;;  %v338_v2 = vsel %vm328_vm0, %v327_v27, 0.0  ;;  %475 = vmatpush.bf16.msra.mxu2 %v467_v6  ;;  %620 = vmatpush.bf16.msrb.mxu1 %v1000_v37 }
  0x54   : > { %v361_v4 = vsel %vm328_vm0, %v351_v56, 0.0  ;;  %528 = vmatpush.bf16.msrb.mxu0 %v522_v14  ;;  %v381_v17 = vmul.f32 %v1471_v25, %v1462_v20  ;;  %v382_v18 = vmul.f32 %v1474_v26, %v1465_v21  ;;  %v466_v23 = vpack.c.bf16 %v370_v9, %v369_v61 }
  0x55   : > { %968 = vmatmul.msk.bf16.vlgmr.msra.gmra.mxu3 %vm405_vm1, %v1495_v43  ;;  %v337_v19 = vadd.f32 %v336_v10, %v335_v15  ;;  %v360_v22 = vadd.f32 %v359_v11, %v358_v16  ;;  %v521_v24 = vpack.c.bf16 %v384_v1, %v383_v0  ;;  %vm824_vm3 = vcmask 1041408  }
  0x56   : > { %v520_v8 = vpack.c.bf16 %v382_v18, %v381_v17  ;;  %1002 = vmatpush.bf16.msrb.mxu3 %v1000_v37  ;;  %vm826_vm4 = vcmask 1042432  }
  0x57   : > { %v339_v7 = vadd.f32 %v338_v2, %v337_v19  ;;  %v362_v12 = vadd.f32 %v361_v4, %v360_v22  ;;  %476 = vmatpush.bf16.msra.mxu2 %v466_v23 }
  0x58   : > { %529 = vmatpush.bf16.msrb.mxu0 %v521_v24 }
  0x59   : > { %v340_v13 = vrot.slane %v339_v7, 4  ;;  %v363_v27 = vrot.slane %v362_v12, 4 }
  0x5a   : > { %965 = vmatmul.msk.bf16.vlgmr.msra.gmra.mxu2 %vm405_vm1, %v1495_v43 }
  0x5b   : > { %v341_v28 = vadd.f32 %v340_v13, %v339_v7  ;;  %v364_v29 = vadd.f32 %v363_v27, %v362_v12  ;;  %1001 = vmatpush.bf16.msrb.mxu2 %v1000_v37 }
  0x5c   : > { %530 = vmatpush.bf16.msrb.mxu0 %v520_v8 }
  0x5d   : > { %v342_v20 = vrot.slane %v341_v28, 2  ;;  %v365_v21 = vrot.slane %v364_v29, 2 }
  0x5f   : > { %v343_v25 = vadd.f32 %v342_v20, %v341_v28  ;;  %v366_v26 = vadd.f32 %v365_v21, %v364_v29 }
  0x61   : > { %960 = vmatmul.msk.bf16.gmra.mxu0 %vm405_vm1, %v998_v30  ;;  %v344_v31 = vrot.slane %v343_v25, 1  ;;  %v367_v32 = vrot.slane %v366_v26, 1 }
  0x62   : > { %963 = vmatmul.msk.bf16.gmra.mxu1 %vm405_vm1, %v998_v30 }
  0x63   : > { %v345_v33 = vadd.f32 %v344_v31, %v343_v25  ;;  %v368_v34 = vadd.f32 %v367_v32, %v366_v26 }
  0x65   : > { %969 = vmatmul.msk.bf16.gmra.mxu3 %vm405_vm1, %v998_v30  ;;  %v1544_v35 = vsel %vm822_vm2, %v345_v33, %v368_v34 }
  0x6a   : > { %966 = vmatmul.msk.bf16.gmra.mxu2 %vm405_vm1, %v998_v30 }
  0x71   : > { %961 = vmatmul.msk.bf16.gmra.mxu0 %vm405_vm1, %v999_v36 }
  0x72   : > { %964 = vmatmul.msk.bf16.gmra.mxu1 %vm405_vm1, %v999_v36 }
  0x75   : > { %970 = vmatmul.msk.bf16.gmra.mxu3 %vm405_vm1, %v999_v36 }
  0x7a   : > { %967 = vmatmul.msk.bf16.gmra.mxu2 %vm405_vm1, %v999_v36 }
  0x81   : > { %971 = vmatmul.msk.bf16.vlgmr.msrb.gmra.mxu0 %vm405_vm1, %v1495_v43 }
  0x91   : > { %972 = vmatmul.msk.bf16.gmra.mxu0 %vm405_vm1, %v998_v30 }
  0xa1   : > { %973 = vmatmul.msk.bf16.gmra.mxu0 %vm405_vm1, %v999_v36 }
  0xce   : > { %v424_v38 = vpop.f32.mrf.mxu0 }
  0xcf   : > { %v451_v39 = vpop.f32.mrf.mxu1 }
  0xd6   : > { %v426_v40 = vpop.f32.mrf.mxu0 }
  0xd7   : > { %v547_v41 = vpack.c.bf16 %v426_v40, %v424_v38  ;;  %v453_v42 = vpop.f32.mrf.mxu1 }
  0xd8   : > { %v505_v44 = vpop.f32.mrf.mxu3  ;;  %v550_v9 = vpack.c.bf16 %v453_v42, %v451_v39 }
  0xd9   : > { %978 = vmatmul.msk.bf16.vlgmr.msrb.gmra.mxu1 %vm328_vm0, %v547_v41 }
  0xdd   : > { %v478_v56 = vpop.f32.mrf.mxu2 }
  0xde   : > { %v429_v45 = vpop.f32.mrf.mxu0 }
  0xdf   : > { %v456_v46 = vpop.f32.mrf.mxu1 }
  0xe0   : > { %v507_v47 = vpop.f32.mrf.mxu3 }
  0xe1   : > { %v556_v43 = vpack.c.bf16 %v507_v47, %v505_v44 }
  0xe5   : > { %v480_v62 = vpop.f32.mrf.mxu2 }
  0xe6   : > { %v431_v48 = vpop.f32.mrf.mxu0  ;;  %v553_v11 = vpack.c.bf16 %v480_v62, %v478_v56 }
  0xe7   : > { %v548_v49 = vpack.c.bf16 %v431_v48, %v429_v45  ;;  %v458_v50 = vpop.f32.mrf.mxu1 }
  0xe8   : > { %v510_v51 = vpop.f32.mrf.mxu3  ;;  %v551_v0 = vpack.c.bf16 %v458_v50, %v456_v46 }
  0xe9   : > { %979 = vmatmul.msk.bf16.gmra.mxu1 %vm328_vm0, %v548_v49 }
  0xed   : > { %v483_v10 = vpop.f32.mrf.mxu2 }
  0xee   : > { %v434_v52 = vpop.f32.mrf.mxu0 }
  0xef   : > { %v461_v53 = vpop.f32.mrf.mxu1 }
  0xf0   : > { %v512_v54 = vpop.f32.mrf.mxu3 }
  0xf1   : > { %v557_v55 = vpack.c.bf16 %v512_v54, %v510_v51 }
  0xf3   : > { %988 = vmatmul.msk.bf16.vlgmr.msrb.gmra.mxu3 %vm328_vm0, %v557_v55 }
  0xf5   : > { %v485_v16 = vpop.f32.mrf.mxu2 }
  0xf6   : > { %v436_v57 = vpop.f32.mrf.mxu0  ;;  %v554_v1 = vpack.c.bf16 %v485_v16, %v483_v10 }
  0xf7   : > { %v549_v58 = vpack.c.bf16 %v436_v57, %v434_v52  ;;  %v463_v59 = vpop.f32.mrf.mxu1 }
  0xf8   : > { %v552_v60 = vpack.c.bf16 %v463_v59, %v461_v53  ;;  %v515_v61 = vpop.f32.mrf.mxu3 }
  0xf9   : > { %980 = vmatmul.msk.bf16.gmra.mxu1 %vm328_vm0, %v549_v58 }
  0xfa   : > { %983 = vmatmul.msk.bf16.vlgmr.msrb.gmra.mxu2 %vm328_vm0, %v552_v60 }
  0xfd   : > { %v488_v4 = vpop.f32.mrf.mxu2 }
  0xfe   : > { %v532_v63 = vpop.f32.mrf.mxu0 }
 0x100   : > { %v517_v3 = vpop.f32.mrf.mxu3 }
 0x101   : > { %v558_v5 = vpack.c.bf16 %v517_v3, %v515_v61 }
 0x103   : > { %989 = vmatmul.msk.bf16.gmra.mxu3 %vm328_vm0, %v558_v5 }
 0x105   : > { %v490_v19 = vpop.f32.mrf.mxu2 }
 0x106   : > { %v534_v6 = vpop.f32.mrf.mxu0  ;;  %v555_v22 = vpack.c.bf16 %v490_v19, %v488_v4 }
 0x107   : > { %v559_v15 = vpack.c.bf16 %v534_v6, %v532_v63 }
 0x109   : > { %981 = vmatmul.msk.bf16.gmra.mxu1 %vm328_vm0, %v550_v9 }
 0x10a   : > { %984 = vmatmul.msk.bf16.gmra.mxu2 %vm328_vm0, %v553_v11 }
 0x10e   : > { %v537_v14 = vpop.f32.mrf.mxu0 }
 0x113   : > { %990 = vmatmul.msk.bf16.gmra.mxu3 %vm328_vm0, %v559_v15 }
 0x116   : > { %v539_v2 = vpop.f32.mrf.mxu0 }
 0x117   : > { %v560_v17 = vpack.c.bf16 %v539_v2, %v537_v14 }
 0x119   : > { %982 = vmatmul.msk.bf16.gmra.mxu1 %vm328_vm0, %v551_v0 }
 0x11a   : > { %985 = vmatmul.msk.bf16.gmra.mxu2 %vm328_vm0, %v554_v1 }
 0x11e   : > { %v542_v18 = vpop.f32.mrf.mxu0 }
 0x123   : > { %991 = vmatmul.msk.bf16.gmra.mxu3 %vm328_vm0, %v560_v17 }
 0x126   : > { %v544_v23 = vpop.f32.mrf.mxu0 }
 0x127   : > { %v561_v24 = vpack.c.bf16 %v544_v23, %v542_v18 }
 0x12a   : > { %986 = vmatmul.msk.bf16.gmra.mxu2 %vm328_vm0, %v555_v22 }
 0x133   : > { %992 = vmatmul.msk.bf16.gmra.mxu3 %vm328_vm0, %v561_v24 }
 0x13a   : > { %987 = vmatmul.msk.bf16.gmra.mxu2 %vm328_vm0, %v556_v43 }
 0x156   : > { %v622_v7 = vpop.f32.mrf.mxu1 }
 0x157   : > { %v697_v55 = vmul.f32 %v622_v7, %v622_v7 }
 0x15e   : > { %v1570_v12 = vpop.f32.mrf.mxu1 }
 0x15f   : > { %v698_v56 = vmul.f32 %v1570_v12, %v1570_v12 }
 0x166   : > { %v1572_v8 = vpop.f32.mrf.mxu1 }
 0x167   : > { %v699_v48 = vmul.f32 %v1572_v8, %v1572_v8 }
 0x16e   : > { %v1574_v27 = vpop.f32.mrf.mxu1 }
 0x16f   : > { %v700_v51 = vmul.f32 %v1574_v27, %v1574_v27 }
 0x176   : > { %v672_v13 = vpop.f32.mrf.mxu3  ;;  %v632_v20 = vpop.f32.mrf.mxu1 }
 0x177   : > { %v701_v46 = vmul.f32 %v632_v20, %v632_v20 }
 0x17d   : > { %v647_v28 = vpop.f32.mrf.mxu2 }
 0x17e   : > { %v674_v29 = vpop.f32.mrf.mxu3  ;;  %v634_v31 = vpop.f32.mrf.mxu1  ;;  %v707_v47 = vmul.f32 %v647_v28, %v647_v28  ;;  %v1594_v52 = vmul.f32 %v647_v28, %v632_v20 }
 0x17f   : > { %v702_v58 = vmul.f32 %v634_v31, %v634_v31 }
 0x180   : > { %v767_v53 = vadd.f32 %v707_v47, %v701_v46  ;;  %v1601_v10 = vmul.f32 2.0, %v1594_v52 }
 0x182   : > { %v773_v11 = vadd.f32 0.0001, %v767_v53 }
 0x185   : > { %v649_v30 = vpop.f32.mrf.mxu2 }
 0x186   : > { %v1576_v21 = vpop.f32.mrf.mxu3  ;;  %v637_v34 = vpop.f32.mrf.mxu1  ;;  %v708_v59 = vmul.f32 %v649_v30, %v649_v30  ;;  %v1603_v14 = vmul.f32 %v649_v30, %v634_v31 }
 0x187   : > { %v703_v49 = vmul.f32 %v637_v34, %v637_v34  ;;  %v709_v60 = vmul.f32 %v637_v34, %v622_v7  ;;  %v725_v17 = vsub.f32 %v1576_v21, %v707_v47 }
 0x188   : > { %v768_v4 = vadd.f32 %v708_v59, %v702_v58 }
 0x189   : > { %v763_v63 = vadd.f32 %v703_v49, %v697_v55  ;;  %v733_v18 = vmul.f32 2.0, %v709_v60 }
 0x18b   : > { %v769_v22 = vadd.f32 0.0001, %v763_v63 }
 0x18d   : > { %v652_v25 = vpop.f32.mrf.mxu2 }
 0x18e   : > { %v1578_v26 = vpop.f32.mrf.mxu3  ;;  %v639_v38 = vpop.f32.mrf.mxu1  ;;  %v715_v3 = vsub.f32 %v652_v25, %v697_v55 }
 0x18f   : > { %v704_v16 = vmul.f32 %v639_v38, %v639_v38  ;;  %v710_v28 = vmul.f32 %v639_v38, %v1570_v12  ;;  %v774_v38 = vadd.f32 0.0001, %v768_v4 }
 0x191   : > { %v764_v20 = vadd.f32 %v704_v16, %v698_v56 }
 0x195   : > { %v1580_v32 = vpop.f32.mrf.mxu2 }
 0x196   : > { %v1582_v33 = vpop.f32.mrf.mxu3  ;;  %v642_v42 = vpop.f32.mrf.mxu1  ;;  %v716_v21 = vsub.f32 %v1580_v32, %v698_v56 }
 0x197   : > { %v705_v50 = vmul.f32 %v642_v42, %v642_v42  ;;  %v711_v30 = vmul.f32 %v642_v42, %v1572_v8  ;;  %v727_v25 = vsub.f32 %v1582_v33, %v709_v60 }
 0x199   : > { %v723_v5 = vsub.f32 %v672_v13, %v705_v50  ;;  %v765_v23 = vadd.f32 %v705_v50, %v699_v48  ;;  %v726_v13 = vsub.f32 %v1578_v26, %v708_v59 }
 0x19d   : > { %v657_v36 = vpop.f32.mrf.mxu2 }
 0x19e   : > { %v1584_v37 = vpop.f32.mrf.mxu3  ;;  %v644_v43 = vpop.f32.mrf.mxu1  ;;  %v717_v57 = vsub.f32 %v657_v36, %v699_v48  ;;  %v745_v48 = vmul.f32 2.0, %v727_v25 }
 0x19f   : > { %v706_v54 = vmul.f32 %v644_v43, %v644_v43  ;;  %v712_v36 = vmul.f32 %v644_v43, %v1574_v27  ;;  %v728_v8 = vsub.f32 %v1584_v37, %v710_v28  ;;  %v770_v27 = vadd.f32 0.0001, %v764_v20 }
 0x1a0   : > { %v777_v0 = vadd.f32 %v723_v5, %v717_v57  ;;  %v734_v57 = vmul.f32 2.0, %v710_v28  ;;  %v751_v59 = vadd.f32 0.0009, %v745_v48  ;;  %v739_v5 = vadd.f32 0.0001, %v733_v18 }
 0x1a1   : > { %v724_v15 = vsub.f32 %v674_v29, %v706_v54  ;;  %v766_v29 = vadd.f32 %v706_v54, %v700_v51  ;;  %v735_v54 = vmul.f32 2.0, %v711_v30  ;;  %v746_v37 = vmul.f32 2.0, %v728_v8 }
 0x1a2   : > { %v783_v31 = vadd.f32 0.0009, %v777_v0  ;;  %v757_v4 = vmul.f32 %v751_v59, %v739_v5 }
 0x1a3   : > { %v772_v42 = vadd.f32 0.0001, %v766_v29 }
 0x1a5   : > { %v659_v39 = vpop.f32.mrf.mxu2 }
 0x1a6   : > { %v1586_v40 = vpop.f32.mrf.mxu3  ;;  %v718_v61 = vsub.f32 %v659_v39, %v700_v51 }
 0x1a8   : > { %v778_v19 = vadd.f32 %v724_v15, %v718_v61 }
 0x1aa   : > { %v784_v39 = vadd.f32 0.0009, %v778_v19 }
 0x1ac   : > { %v790_v43 = vmul.f32 %v784_v39, %v772_v42 }
 0x1ad   : > { %v662_v41 = vpop.f32.mrf.mxu2 }
 0x1ae   : > { %v1588_v44 = vpop.f32.mrf.mxu3  ;;  %v719_v1 = vsub.f32 %v662_v41, %v701_v46  ;;  %v729_v41 = vsub.f32 %v1586_v40, %v711_v30  ;;  %v771_v46 = vadd.f32 0.0001, %v765_v23  ;;  %v743_v23 = vadd.f32 0.0001, %v1601_v10 }
 0x1af   : > { %v730_v33 = vsub.f32 %v1588_v44, %v712_v36 }
 0x1b0   : > { %v779_v34 = vadd.f32 %v725_v17, %v719_v1  ;;  %v747_v53 = vmul.f32 2.0, %v729_v41  ;;  %v738_v1 = vmul.f32 2.0, %v1603_v14 }
 0x1b2   : > { %v785_v50 = vadd.f32 0.0009, %v779_v34  ;;  %v753_v63 = vadd.f32 0.0009, %v747_v53  ;;  %v744_v29 = vadd.f32 0.0001, %v738_v1 }
 0x1b4   : > { %v791_v60 = vmul.f32 %v785_v50, %v773_v11 }
 0x1b5   : > { %v664_v45 = vpop.f32.mrf.mxu2 }
 0x1b6   : > { %v1598_v6 = vpop.f32.mrf.mxu3  ;;  %v720_v24 = vsub.f32 %v664_v45, %v702_v58  ;;  %v748_v58 = vmul.f32 2.0, %v730_v33 }
 0x1b7   : > { %v731_v40 = vsub.f32 %v1598_v6, %v1594_v52  ;;  %v752_v6 = vadd.f32 0.0009, %v746_v37 }
 0x1b8   : > { %v780_v26 = vadd.f32 %v726_v13, %v720_v24  ;;  %v754_v15 = vadd.f32 0.0009, %v748_v58 }
 0x1ba   : > { %v786_v55 = vadd.f32 0.0009, %v780_v26 }
 0x1bc   : > { %v792_v52 = vmul.f32 %v786_v55, %v774_v38 }
 0x1bd   : > { %v667_v62 = vpop.f32.mrf.mxu2 }
 0x1be   : > { %v721_v9 = vsub.f32 %v667_v62, %v703_v49  ;;  %v789_v49 = vmul.f32 %v783_v31, %v771_v46  ;;  %v694_v32 = vpop.f32.mrf.mxu3  ;;  %v736_v62 = vmul.f32 2.0, %v712_v36 }
 0x1bf   : > { %v732_v44 = vsub.f32 %v694_v32, %v1603_v14 }
 0x1c0   : > { %v775_v2 = vadd.f32 %v721_v9, %v715_v3  ;;  %v749_v3 = vmul.f32 2.0, %v731_v40  ;;  %v741_v9 = vadd.f32 0.0001, %v735_v54  ;;  %v742_v17 = vadd.f32 0.0001, %v736_v62 }
 0x1c2   : > { %v781_v7 = vadd.f32 0.0009, %v775_v2  ;;  %v740_v2 = vadd.f32 0.0001, %v734_v57  ;;  %v759_v11 = vmul.f32 %v753_v63, %v741_v9  ;;  %v755_v19 = vadd.f32 0.0009, %v749_v3 }
 0x1c4   : > { %v787_v47 = vmul.f32 %v781_v7, %v769_v22  ;;  %v758_v24 = vmul.f32 %v752_v6, %v740_v2  ;;  %v760_v7 = vmul.f32 %v754_v15, %v742_v17  ;;  %v761_v25 = vmul.f32 %v755_v19, %v743_v23 }
 0x1c5   : > { %v669_v45 = vpop.f32.mrf.mxu2 }
 0x1c6   : > { %v722_v12 = vsub.f32 %v669_v45, %v704_v16  ;;  %1075 = vrcp.f32 %v787_v47  ;;  %v750_v16 = vmul.f32 2.0, %v732_v44 }
 0x1c7   : > { %1077 = vrcp.f32 %v789_v49 }
 0x1c8   : > { %v776_v51 = vadd.f32 %v722_v12, %v716_v21  ;;  %1079 = vrcp.f32 %v790_v43  ;;  %v756_v28 = vadd.f32 0.0009, %v750_v16 }
 0x1ca   : > { %v782_v56 = vadd.f32 0.0009, %v776_v51  ;;  %v762_v36 = vmul.f32 %v756_v28, %v744_v29 }
 0x1cc   : > { %v788_v61 = vmul.f32 %v782_v56, %v770_v27  ;;  %v1076_v0 = vpop.eup %1075 }
 0x1cd   : > { %v1078_v22 = vpop.eup %1077  ;;  %v799_v13 = vmul.f32 %v1076_v0, %v757_v4 }
 0x1ce   : > { %1081 = vrcp.f32 %v788_v61  ;;  %v1080_v18 = vpop.eup %1079  ;;  %v801_v20 = vmul.f32 %v1078_v22, %v759_v11 }
 0x1cf   : > { %1083 = vrcp.f32 %v791_v60  ;;  %v802_v34 = vmul.f32 %v1080_v18, %v760_v7  ;;  %v805_v21 = vsel %vm328_vm0, %v799_v13, 0.0 }
 0x1d0   : > { %1085 = vrcp.f32 %v792_v52  ;;  %v808_v45 = vsel %vm328_vm0, %v801_v20, 0.0 }
 0x1d1   : > { %v810_v47 = vsel %vm328_vm0, %v802_v34, 0.0 }
 0x1d4   : > { %v1082_v30 = vpop.eup %1081 }
 0x1d5   : > { %v800_v14 = vmul.f32 %v1082_v30, %v758_v24  ;;  %v1084_v31 = vpop.eup %1083 }
 0x1d6   : > { %v1086_v10 = vpop.eup %1085  ;;  %v803_v46 = vmul.f32 %v1084_v31, %v761_v25 }
 0x1d7   : > { %v806_v39 = vsel %vm328_vm0, %v800_v14, 0.0  ;;  %v804_v12 = vmul.f32 %v1086_v10, %v762_v36 }
 0x1d8   : > { %v807_v41 = vadd.f32 %v806_v39, %v805_v21  ;;  %v812_v8 = vsel %vm328_vm0, %v803_v46, 0.0 }
 0x1d9   : > { %v814_v33 = vsel %vm328_vm0, %v804_v12, 0.0 }
 0x1da   : > { %v809_v26 = vadd.f32 %v808_v45, %v807_v41 }
 0x1dc   : > { %v811_v38 = vadd.f32 %v810_v47, %v809_v26 }
 0x1de   : > { %v813_v42 = vadd.f32 %v812_v8, %v811_v38 }
 0x1e0   : > { %v815_v48 = vadd.f32 %v814_v33, %v813_v42 }
 0x1e2   : > { %v816_v49 = vrot.slane %v815_v48, 4 }
 0x1e4   : > { %v817_v50 = vadd.f32 %v816_v49, %v815_v48 }
 0x1e6   : > { %v818_v32 = vrot.slane %v817_v50, 2 }
 0x1e8   : > { %v819_v51 = vadd.f32 %v818_v32, %v817_v50 }
 0x1ea   : > { %v820_v27 = vrot.slane %v819_v51, 1 }
 0x1ec   : > { %v821_v43 = vadd.f32 %v820_v27, %v819_v51 }
 0x1ee   : > { %v825_v53 = vsel %vm824_vm3, %v1544_v35, %v821_v43 }
 0x1ef   : > { %v827_v40 = vsel %vm826_vm4, %v825_v53, 0.0 }
 0x1f0   : > { %828 = vst.msk [vmem:[%s294_s29] sm:$0xff] %vm328_vm0, %v827_v40 }
 0x1f1 PF: > { %p18_p4 = scmp.ge.s32.totalorder %s1332_s8, 4   ;;  %s1654_s15 = smov %s1245_s16 }
 0x1f2   : > { %s1655_s16 = smov %s1249_s17  ;;  %s1656_s17 = smov %s1343_s12 }
 0x1f3   : > { %s1657_s18 = smov %s1332_s8  ;;  %20 = sbr.rel (!%p18_p4) target bundleno = 6 (0x6), region = 97 }
 0x1f8   :  { %848 = vsyncpa [#allocation3], 1 }
 0x1f9   :  { %850 = vsyncpa [#allocation3 + $0x1], 1 }
 0x1fa   :  { %851 = vsyncpa [#allocation5], 1 }
 0x1fb   :  { %853 = vsyncpa [#allocation5 + $0x1], 1 }
 0x1fc   :  { %854 = vsyncpa [#allocation8], 1 }

</bundles_post_ra>
